<compile_context>
chip_gen: v6e
topology: v6e:2x2x1
jax: 0.10.0
libtpu: 0.0.40
codegen_flags: <defaults>
</compile_context>

<pallas_src>
import functools
import math

import jax
import jax.numpy as jnp
from jax.experimental import pallas as pl
from jax.experimental.pallas import tpu as pltpu

LN_EPS = 1e-5  # PyTorch nn.LayerNorm default


def _segmerge_kernel(x_ref, gamma_ref, beta_ref, w_ref, b_ref, o_ref):
    # x_ref:     (tm, K)  rows of merged segments
    # gamma_ref: (1, K)   LayerNorm weight
    # beta_ref:  (1, K)   LayerNorm bias
    # w_ref:     (K, N)   linear weight (pre-transposed), native dtype
    # b_ref:     (1, N)   linear bias
    xf = x_ref[...].astype(jnp.float32)
    k = xf.shape[-1]

    # One-pass LayerNorm statistics in f32: var = E[x^2] - mean^2.
    inv_k = 1.0 / k
    s1 = jnp.sum(xf, axis=-1, keepdims=True)
    s2 = jnp.sum(xf * xf, axis=-1, keepdims=True)
    mean = s1 * inv_k
    var = jnp.maximum(s2 * inv_k - mean * mean, 0.0)
    inv_std = jax.lax.rsqrt(var + LN_EPS)

    y = (xf - mean) * inv_std
    y = y * gamma_ref[...].astype(jnp.float32) + beta_ref[...].astype(jnp.float32)

    # Feed the MXU in the weight's dtype (bf16 weights -> bf16 MXU path) with
    # f32 accumulation.  Do NOT up-cast the resident weight tile every step.
    out = jnp.dot(y.astype(w_ref.dtype), w_ref[...],
                  preferred_element_type=jnp.float32)
    out = out + b_ref[...].astype(jnp.float32)
    o_ref[...] = out.astype(o_ref.dtype)


def _max_tm_for_vmem(K, N, in_bytes, w_bytes, budget_bytes):
    """Largest row tile (multiple of 8) whose working set fits the budget."""
    fixed = 2 * K * N * w_bytes + 2 * (2 * K + N) * 4          # weight + LN/bias params
    per_row = 2 * K * in_bytes + 2 * N * in_bytes + 3 * K * 4  # dbl-buf I/O + f32 temps
    avail = budget_bytes - fixed
    if avail <= per_row * 8:
        return 8
    return max(8, (avail // per_row) // 8 * 8)


def _choose_row_tile(M, desired, K, N, in_bytes, w_bytes):
    """Pick (tm, M_pad).  Prefer tiles that divide M (no HBM padding copy)."""
    # 16 MiB working-set budget keeps the tile safe even on v7x (64 MiB VMEM).
    cap = _max_tm_for_vmem(K, N, in_bytes, w_bytes, budget_bytes=16 << 20)
    desired = max(8, min(desired, cap))
    if M <= desired:
        return M, M                      # single block == full row extent (legal)
    t = desired - desired % 8
    while t >= 64:                       # look for a divisor of M, multiple of 8
        if M % t == 0:
            return t, M
        t -= 8
    tm = max(8, desired - desired % 8)   # rare fallback: pad rows
    return tm, pl.cdiv(M, tm) * tm


@functools.partial(jax.jit, static_argnames=("win_size", "tm"))
def seg_merging(x, gamma, beta, weight, bias, *, win_size, tm=256):
    """SegMerging forward.

    x:      [B, D, seg_num, d_model]
    gamma:  [win_size * d_model]             (LayerNorm weight)
    beta:   [win_size * d_model]             (LayerNorm bias)
    weight: [d_model, win_size * d_model]    (PyTorch nn.Linear layout)
    bias:   [d_model]
    returns [B, D, ceil(seg_num/win_size), d_model]
    """
    B, D, seg_num, dm = x.shape

    # Repeat the last segment so seg_num % win_size == 0 (matches PyTorch).
    if seg_num % win_size != 0:
        pad_count = win_size - seg_num % win_size
        pad_tensor = jnp.broadcast_to(x[:, :, -1:, :], (B, D, pad_count, dm))
        x = jnp.concatenate([x, pad_tensor], axis=2)
        seg_num = x.shape[2]

    seg_new = seg_num // win_size
    K = win_size * dm
    N = dm

    # Strided-slice + concat along the feature dim == contiguous reshape.
    x_rows = x.reshape(B * D * seg_new, K)
    M = x_rows.shape[0]

    in_bytes = jnp.dtype(x.dtype).itemsize
    w_bytes = jnp.dtype(weight.dtype).itemsize
    tm_eff, M_pad = _choose_row_tile(M, tm, K, N, in_bytes, w_bytes)
    if M_pad != M:
        # Rare fallback only (when no divisor-friendly tile exists).  Padded
        # zero rows have var=0 so rsqrt(0+eps) stays finite; the corresponding
        # outputs are sliced off below.
        x_rows = jnp.pad(x_rows, ((0, M_pad - M), (0, 0)))

    gamma2 = gamma.reshape(1, K)
    beta2 = beta.reshape(1, K)
    w_t = weight.T                       # (K, N), kept in its native dtype
    bias2 = bias.reshape(1, N)

    out_bytes = in_bytes
    vmem_est = (2 * tm_eff * K * in_bytes + 2 * tm_eff * N * out_bytes
                + 2 * K * N * w_bytes + 2 * (2 * K + N) * 4
                + 4 * tm_eff * K * 4)
    vmem_limit = int(min(64 << 20, max(32 << 20, 2 * vmem_est)))

    cost = pl.CostEstimate(
        flops=2 * M_pad * K * N,
        transcendentals=M_pad,           # one rsqrt per row
        bytes_accessed=(M_pad * K * in_bytes + K * N * w_bytes
                        + M_pad * N * out_bytes),
    )

    out_rows = pl.pallas_call(
        _segmerge_kernel,
        out_shape=jax.ShapeDtypeStruct((M_pad, N), x.dtype),
        grid_spec=pltpu.PrefetchScalarGridSpec(
            num_scalar_prefetch=0,
            grid=(M_pad // tm_eff,),
            in_specs=[
                pl.BlockSpec((tm_eff, K), lambda i: (i, 0)),
                pl.BlockSpec((1, K), lambda i: (0, 0)),
                pl.BlockSpec((1, K), lambda i: (0, 0)),
                pl.BlockSpec((K, N), lambda i: (0, 0)),
                pl.BlockSpec((1, N), lambda i: (0, 0)),
            ],
            out_specs=pl.BlockSpec((tm_eff, N), lambda i: (i, 0)),
        ),
        compiler_params=pltpu.CompilerParams(
            dimension_semantics=("parallel",),   # shards rows across v7x's 2 TCs
            vmem_limit_bytes=vmem_limit),
        cost_estimate=cost,
    )(x_rows, gamma2, beta2, w_t, bias2)

    return out_rows[:M].reshape(B, D, seg_new, N)


def _reference(x, gamma, beta, weight, bias, win_size):
    """Pure-JAX reference mirroring the PyTorch forward (f32 math)."""
    B, D, seg_num, dm = x.shape
    x = x.astype(jnp.float32)
    if seg_num % win_size != 0:
        pad_count = win_size - seg_num % win_size
        pad_tensor = jnp.broadcast_to(x[:, :, -1:, :], (B, D, pad_count, dm))
        x = jnp.concatenate([x, pad_tensor], axis=2)
        seg_num = x.shape[2]
    merged = jnp.concatenate(
        [x[:, :, i::win_size, :] for i in range(win_size)], axis=-1)
    mean = jnp.mean(merged, axis=-1, keepdims=True)
    var = jnp.mean((merged - mean) ** 2, axis=-1, keepdims=True)
    normed = (merged - mean) / jnp.sqrt(var + LN_EPS)
    normed = normed * gamma.astype(jnp.float32) + beta.astype(jnp.float32)
    return normed @ weight.astype(jnp.float32).T + bias.astype(jnp.float32)


if __name__ == "__main__":
    key = jax.random.PRNGKey(0)
    B, D, seg_num, d_model = 2, 4, 8, 32
    win_size = 2
    K = win_size * d_model

    kx, kw, kb = jax.random.split(key, 3)
    x = jax.random.normal(kx, (B, D, seg_num, d_model), dtype=jnp.float32)

    # Deterministic parameter init (shapes from the module __init__).
    gamma = jnp.ones((K,), dtype=jnp.float32)        # LayerNorm weight
    beta = jnp.zeros((K,), dtype=jnp.float32)        # LayerNorm bias
    bound = 1.0 / math.sqrt(K)
    weight = jax.random.uniform(kw, (d_model, K), jnp.float32, -bound, bound)
    bias = jax.random.uniform(kb, (d_model,), jnp.float32, -bound, bound)

    # --- f32 path (matches PyTorch numerics: f32 LN stats, f32 matmul). ---
    out = jax.block_until_ready(
        seg_merging(x, gamma, beta, weight, bias, win_size=win_size))
    ref = _reference(x, gamma, beta, weight, bias, win_size)
    assert out.shape == (B, D, seg_num // win_size, d_model), out.shape
    err = float(jnp.max(jnp.abs(out - ref)))
    assert err < 2e-4, err

    # --- bf16 path: LN stats stay f32; MXU runs bf16 x bf16 -> f32 acc. ---
    x16 = x.astype(jnp.bfloat16)
    w16 = weight.astype(jnp.bfloat16)
    b16 = bias.astype(jnp.bfloat16)
    out16 = jax.block_until_ready(
        seg_merging(x16, gamma, beta, w16, b16, win_size=win_size))
    ref16 = _reference(x16, gamma, beta, w16, b16, win_size)
    err16 = float(jnp.max(jnp.abs(out16.astype(jnp.float32) - ref16)))
    assert err16 < 5e-2, err16

    # --- odd seg_num exercises the repeat-last-segment padding path. ---
    x_odd = x[:, :, :7, :]
    out_odd = jax.block_until_ready(
        seg_merging(x_odd, gamma, beta, weight, bias, win_size=win_size))
    ref_odd = _reference(x_odd, gamma, beta, weight, bias, win_size)
    assert out_odd.shape == (B, D, 4, d_model), out_odd.shape
    err_odd = float(jnp.max(jnp.abs(out_odd - ref_odd)))
    assert err_odd < 2e-4, err_odd

    print("KERNEL_OK")
</pallas_src>

<mosaic_0001>
module attributes {stable_mosaic.version = 11 : i64} {
  func.func @_segmerge_kernel(%arg0: i32, %arg1: memref<32x64xf32, #tpu.memory_space<vmem>>, %arg2: memref<1x64xf32, #tpu.memory_space<vmem>>, %arg3: memref<1x64xf32, #tpu.memory_space<vmem>>, %arg4: memref<64x32xf32, #tpu.memory_space<vmem>>, %arg5: memref<1x32xf32, #tpu.memory_space<vmem>>, %arg6: memref<32x32xf32, #tpu.memory_space<vmem>>) attributes {dimension_semantics = [#tpu.dimension_semantics<parallel>], iteration_bounds = array<i64: 1>, scalar_prefetch = 0 : i64, scratch_operands = 0 : i64, tpu.core_type = #tpu.core_type<tc>, window_params = [{transform_indices = @transform_0, window_bounds = array<i64: 32, 64>}, {pipeline_mode = #tpu.pipeline_mode<synchronous>, transform_indices = @transform_1, window_bounds = array<i64: 1, 64>}, {pipeline_mode = #tpu.pipeline_mode<synchronous>, transform_indices = @transform_2, window_bounds = array<i64: 1, 64>}, {pipeline_mode = #tpu.pipeline_mode<synchronous>, transform_indices = @transform_3, window_bounds = array<i64: 64, 32>}, {pipeline_mode = #tpu.pipeline_mode<synchronous>, transform_indices = @transform_4, window_bounds = array<i64: 1, 32>}, {transform_indices = @transform_5, window_bounds = array<i64: 32, 32>}]} {
    %c0 = arith.constant 0 : index
    %c0_0 = arith.constant 0 : index
    %0 = vector.load %arg1[%c0, %c0_0] : memref<32x64xf32, #tpu.memory_space<vmem>>, vector<32x64xf32>
    %cst = arith.constant dense<0.000000e+00> : vector<32xf32>
    %1 = vector.multi_reduction <add>, %0, %cst [1] : vector<32x64xf32> to vector<32xf32>
    %2 = vector.shape_cast %1 : vector<32xf32> to vector<32x1xf32>
    %3 = arith.mulf %0, %0 : vector<32x64xf32>
    %cst_1 = arith.constant dense<0.000000e+00> : vector<32xf32>
    %4 = vector.multi_reduction <add>, %3, %cst_1 [1] : vector<32x64xf32> to vector<32xf32>
    %5 = vector.shape_cast %4 : vector<32xf32> to vector<32x1xf32>
    %cst_2 = arith.constant 1.562500e-02 : f32
    %6 = vector.broadcast %cst_2 : f32 to vector<32x1xf32>
    %7 = arith.mulf %2, %6 : vector<32x1xf32>
    %cst_3 = arith.constant 1.562500e-02 : f32
    %8 = vector.broadcast %cst_3 : f32 to vector<32x1xf32>
    %9 = arith.mulf %5, %8 : vector<32x1xf32>
    %10 = arith.mulf %7, %7 : vector<32x1xf32>
    %11 = arith.subf %9, %10 : vector<32x1xf32>
    %cst_4 = arith.constant 0.000000e+00 : f32
    %12 = vector.broadcast %cst_4 : f32 to vector<32x1xf32>
    %13 = arith.maximumf %11, %12 : vector<32x1xf32>
    %cst_5 = arith.constant 9.99999974E-6 : f32
    %14 = vector.broadcast %cst_5 : f32 to vector<32x1xf32>
    %15 = arith.addf %13, %14 : vector<32x1xf32>
    %16 = math.rsqrt %15 : vector<32x1xf32>
    %17 = vector.broadcast %7 : vector<32x1xf32> to vector<32x64xf32>
    %18 = arith.subf %0, %17 : vector<32x64xf32>
    %19 = vector.broadcast %16 : vector<32x1xf32> to vector<32x64xf32>
    %20 = arith.mulf %18, %19 : vector<32x64xf32>
    %c0_6 = arith.constant 0 : index
    %c0_7 = arith.constant 0 : index
    %21 = vector.load %arg2[%c0_6, %c0_7] : memref<1x64xf32, #tpu.memory_space<vmem>>, vector<1x64xf32>
    %22 = vector.broadcast %21 : vector<1x64xf32> to vector<32x64xf32>
    %23 = arith.mulf %20, %22 : vector<32x64xf32>
    %c0_8 = arith.constant 0 : index
    %c0_9 = arith.constant 0 : index
    %24 = vector.load %arg3[%c0_8, %c0_9] : memref<1x64xf32, #tpu.memory_space<vmem>>, vector<1x64xf32>
    %25 = vector.broadcast %24 : vector<1x64xf32> to vector<32x64xf32>
    %26 = arith.addf %23, %25 : vector<32x64xf32>
    %c0_10 = arith.constant 0 : index
    %c0_11 = arith.constant 0 : index
    %27 = vector.load %arg4[%c0_10, %c0_11] : memref<64x32xf32, #tpu.memory_space<vmem>>, vector<64x32xf32>
    %cst_12 = arith.constant dense<0.000000e+00> : vector<32x32xf32>
    %28 = tpu.matmul %26, %27, %cst_12 {dimension_numbers = #tpu.dot_dimension_numbers<[1], [0], [0], [1], [0, 0, 1, 1], [], []>} : vector<32x64xf32>, vector<64x32xf32>, vector<32x32xf32> -> vector<32x32xf32>
    %c0_13 = arith.constant 0 : index
    %c0_14 = arith.constant 0 : index
    %29 = vector.load %arg5[%c0_13, %c0_14] : memref<1x32xf32, #tpu.memory_space<vmem>>, vector<1x32xf32>
    %30 = vector.broadcast %29 : vector<1x32xf32> to vector<32x32xf32>
    %31 = arith.addf %28, %30 : vector<32x32xf32>
    %c0_15 = arith.constant 0 : index
    %c0_16 = arith.constant 0 : index
    %32 = vector.load %arg6[%c0_15, %c0_16] : memref<32x32xf32, #tpu.memory_space<vmem>>, vector<32x32xf32>
    tpu.vector_store %arg6[%c0_15, %c0_16], %31 {strides = array<i32>} : memref<32x32xf32, #tpu.memory_space<vmem>>, vector<32x32xf32>,
    return
  }
  func.func @transform_0(%arg0: i32) -> (i32, i32) {
    %c0_i32 = arith.constant 0 : i32
    %c0_i32_0 = arith.constant 0 : i32
    return %arg0, %c0_i32 : i32, i32
  }
  func.func @transform_1(%arg0: i32) -> (i32, i32) {
    %c0_i32 = arith.constant 0 : i32
    %c0_i32_0 = arith.constant 0 : i32
    %c0_i32_1 = arith.constant 0 : i32
    return %c0_i32, %c0_i32_0 : i32, i32
  }
  func.func @transform_2(%arg0: i32) -> (i32, i32) {
    %c0_i32 = arith.constant 0 : i32
    %c0_i32_0 = arith.constant 0 : i32
    %c0_i32_1 = arith.constant 0 : i32
    return %c0_i32, %c0_i32_0 : i32, i32
  }
  func.func @transform_3(%arg0: i32) -> (i32, i32) {
    %c0_i32 = arith.constant 0 : i32
    %c0_i32_0 = arith.constant 0 : i32
    %c0_i32_1 = arith.constant 0 : i32
    return %c0_i32, %c0_i32_0 : i32, i32
  }
  func.func @transform_4(%arg0: i32) -> (i32, i32) {
    %c0_i32 = arith.constant 0 : i32
    %c0_i32_0 = arith.constant 0 : i32
    %c0_i32_1 = arith.constant 0 : i32
    return %c0_i32, %c0_i32_0 : i32, i32
  }
  func.func @transform_5(%arg0: i32) -> (i32, i32) {
    %c0_i32 = arith.constant 0 : i32
    %c0_i32_0 = arith.constant 0 : i32
    return %arg0, %c0_i32 : i32, i32
  }
}

</mosaic_0001>

<bundles_post_ra>
// kernel: seg_merging.1
= control target key start
LH: loop header
LB: loop body
LE: loop exit
PB: predicated region body
PF: predicated region fallthrough
CT: control target
= control target key end

     0   :  { %vm25_vm0 = vcmask 523264   ;;  %s452_s0 = inlined_call_operand.vmem [shape: f32[32,64], index: 0, kind: input, shape index: {}]   ;;  %s453_s1 = inlined_call_operand.vmem [shape: f32[1,64], index: 1, kind: input, shape index: {}]   ;;  %s454_s2 = inlined_call_operand.vmem [shape: f32[1,64], index: 2, kind: input, shape index: {}]   ;;  %s455_s3 = inlined_call_operand.vmem [shape: f32[64,32], index: 3, kind: input, shape index: {}]   ;;  %s456_s4 = inlined_call_operand.vmem [shape: f32[1,32], index: 4, kind: input, shape index: {}]   ;;  %s457_s5 = inlined_call_operand.hbm [shape: f32[32,32], index: 5, kind: output, shape index: {}]  }
   0x1   :  { %v371_v0 = vld [vmem:[%s452_s0 + $0x8] sm:$0xff]  ;;  %v376_v1 = vld [vmem:[%s452_s0] sm:$0xff]  ;;  %v381_v2 = vld [vmem:[%s452_s0 + $0x18] sm:$0xff] }
   0x2   :  { %v29_v3 = vsel %vm25_vm0, %v371_v0, 0.0  ;;  %v26_v4 = vsel %vm25_vm0, %v376_v1, 0.0  ;;  %v390_v5 = vld [vmem:[%s452_s0 + $0x10] sm:$0xff] }
   0x3   :  { %10 = vsyncpa [#allocation3], 0  ;;  %30 = vadd.xlane.f32.xlu1 %v29_v3  ;;  %27 = vadd.xlane.f32.xlu0 %v26_v4  ;;  %v35_v6 = vsel %vm25_vm0, %v381_v2, 0.0  ;;  %v32_v7 = vsel %vm25_vm0, %v390_v5, 0.0  ;;  %v40_v8 = vmul.f32 %v390_v5, %v390_v5  ;;  %v38_v9 = vmul.f32 %v376_v1, %v376_v1  ;;  %v119_v16 = vld [vmem:[%s455_s3 + $0x38] sm:$0xff]  ;;  %v118_v17 = vld [vmem:[%s455_s3 + $0x30] sm:$0xff] }
   0x4   :  { %v41_v12 = vmul.f32 %v381_v2, %v381_v2  ;;  %v39_v13 = vmul.f32 %v371_v0, %v371_v0  ;;  %264 = vmatprep.subr.mxu0 %v119_v16  ;;  %286 = vmatprep.subr.mxu1 %v119_v16  ;;  %v117_v18 = vld [vmem:[%s455_s3 + $0x28] sm:$0xff]  ;;  %v116_v19 = vld [vmem:[%s455_s3 + $0x20] sm:$0xff]  ;;  %v115_v20 = vld [vmem:[%s455_s3 + $0x18] sm:$0xff]  ;;  %vm224_vm1 = vcmask 261120   ;;  %s335_s19 = smov [#allocation2]  }
   0x5   :  { %v48_v10 = vsel %vm25_vm0, %v40_v8, 0.0  ;;  %v42_v11 = vsel %vm25_vm0, %v38_v9, 0.0  ;;  %265 = vmatpush3.msra.mxu0 %v119_v16  ;;  %294 = vmatpush3.msra.mxu1 %v119_v16  ;;  %v114_v21 = vld [vmem:[%s455_s3 + $0x10] sm:$0xff]  ;;  %v113_v22 = vld [vmem:[%s455_s3 + $0x8] sm:$0xff]  ;;  %v112_v23 = vld [vmem:[%s455_s3] sm:$0xff]  ;;  %s234_s20 = sshll.u32 %s335_s19, 4  ;;  %s235_s20 = int_to_ptr.vmem [resolvable:$true] %s234_s20 }
   0x6   :  { %v51_v14 = vsel %vm25_vm0, %v41_v12, 0.0  ;;  %v45_v15 = vsel %vm25_vm0, %v39_v13, 0.0  ;;  %266 = vmatprep.subr.mxu0 %v118_v17  ;;  %287 = vmatprep.subr.mxu1 %v118_v17  ;;  %v245_v59 = vld [vmem:[%s453_s1] ss:$0 sm:$0xff]  ;;  %s313_s21 = scalar_lea.vmem %s235_s20, 512  ;;  %p318_p1 = scmp.lt.s32.totalorder %s235_s20, %s235_s20 }
   0x7   :  { %36 = vadd.xlane.f32.xlu1 %v35_v6  ;;  %33 = vadd.xlane.f32.xlu0 %v32_v7  ;;  %v246_v63 = vld [vmem:[%s454_s2] ss:$0 sm:$0xff]  ;;  %p314_p0 = scmp.ne.s32.totalorder %s235_s20, %s313_s21  ;;  %p319_p2 = scmp.lt.s32.totalorder %s313_s21, %s313_s21 }
   0x8   :  { %267 = vmatpush3.msra.mxu0 %v118_v17  ;;  %295 = vmatpush3.msra.mxu1 %v118_v17 }
   0x9   :  { %268 = vmatprep.subr.mxu0 %v117_v18  ;;  %288 = vmatprep.subr.mxu1 %v117_v18  ;;  %p320_p3 = por %p319_p2, %p318_p1 }
   0xa   :  { %269 = vmatpush3.msra.mxu0 %v117_v18  ;;  %296 = vmatpush3.msra.mxu1 %v117_v18 }
   0xb   :  { %49 = vadd.xlane.f32.xlu1 %v48_v10  ;;  %43 = vadd.xlane.f32.xlu0 %v42_v11  ;;  %p321_p4 = pnand %p320_p3, %p314_p0 }
   0xc   :  { %270 = vmatprep.subr.mxu0 %v116_v19  ;;  %289 = vmatprep.subr.mxu1 %v116_v19 }
   0xd   :  { %271 = vmatpush3.msra.mxu0 %v116_v19  ;;  %297 = vmatpush3.msra.mxu1 %v116_v19 }
   0xe   :  { %272 = vmatprep.subr.mxu0 %v115_v20  ;;  %290 = vmatprep.subr.mxu1 %v115_v20 }
   0xf   :  { %52 = vadd.xlane.f32.xlu1 %v51_v14  ;;  %46 = vadd.xlane.f32.xlu0 %v45_v15 }
  0x10   :  { %273 = vmatpush3.msra.mxu0 %v115_v20  ;;  %298 = vmatpush3.msra.mxu1 %v115_v20 }
  0x11   :  { %274 = vmatprep.subr.mxu0 %v114_v21  ;;  %291 = vmatprep.subr.mxu1 %v114_v21 }
  0x12   :  { %275 = vmatpush3.msra.mxu0 %v114_v21  ;;  %299 = vmatpush3.msra.mxu1 %v114_v21 }
  0x13   :  { %276 = vmatprep.subr.mxu0 %v113_v22  ;;  %292 = vmatprep.subr.mxu1 %v113_v22 }
  0x14   :  { %277 = vmatpush3.msra.mxu0 %v113_v22  ;;  %300 = vmatpush3.msra.mxu1 %v113_v22 }
  0x15   :  { %278 = vmatprep.subr.mxu0 %v112_v23  ;;  %293 = vmatprep.subr.mxu1 %v112_v23 }
  0x16   :  { %279 = vmatpush3.msra.mxu0 %v112_v23  ;;  %301 = vmatpush3.msra.mxu1 %v112_v23 }
  0x8c   :  { %v31_v24 = vpop.xlane.xlu1 %30  ;;  %v28_v25 = vpop.xlane.xlu0 %27 }
  0x8d   :  { %v54_v28 = vmul.f32 0.015625, %v28_v25  ;;  %v55_v30 = vmul.f32 0.015625, %v31_v24 }
  0x8f   :  { %v62_v34 = vmul.f32 %v54_v28, %v54_v28  ;;  %v63_v40 = vmul.f32 %v55_v30, %v55_v30  ;;  %v82_v58 = vsub.f32 %v376_v1, %v54_v28 }
  0x90   :  { %v37_v26 = vpop.xlane.xlu1 %36  ;;  %v34_v27 = vpop.xlane.xlu0 %33 }
  0x91   :  { %v56_v29 = vmul.f32 0.015625, %v34_v27  ;;  %v57_v31 = vmul.f32 0.015625, %v37_v26 }
  0x93   :  { %v64_v35 = vmul.f32 %v56_v29, %v56_v29  ;;  %v65_v41 = vmul.f32 %v57_v31, %v57_v31  ;;  %v84_v56 = vsub.f32 %v390_v5, %v56_v29  ;;  %v85_v3 = vsub.f32 %v381_v2, %v57_v31 }
  0x94   :  { %v50_v32 = vpop.xlane.xlu1 %49  ;;  %v44_v33 = vpop.xlane.xlu0 %43  ;;  %v83_v5 = vsub.f32 %v371_v0, %v55_v30  ;;  %v247_v0 = vld [vmem:[%s456_s4] ss:$0 sm:$0xff] }
  0x95   :  { %v60_v36 = vmul.f32 0.015625, %v50_v32  ;;  %v58_v37 = vmul.f32 0.015625, %v44_v33 }
  0x97   :  { %v68_v38 = vsub.f32 %v60_v36, %v64_v35  ;;  %v66_v39 = vsub.f32 %v58_v37, %v62_v34 }
  0x98   :  { %v53_v42 = vpop.xlane.xlu1 %52  ;;  %v47_v43 = vpop.xlane.xlu0 %46 }
  0x99   :  { %v72_v44 = vmax.f32 %v68_v38, 0.0  ;;  %v70_v45 = vmax.f32 %v66_v39, 0.0  ;;  %v61_v46 = vmul.f32 0.015625, %v53_v42  ;;  %v59_v47 = vmul.f32 0.015625, %v47_v43 }
  0x9b   :  { %v76_v48 = vadd.f32 1e-05, %v72_v44  ;;  %v74_v49 = vadd.f32 1e-05, %v70_v45  ;;  %v69_v50 = vsub.f32 %v61_v46, %v65_v41  ;;  %v67_v51 = vsub.f32 %v59_v47, %v63_v40 }
  0x9d   :  { %305 = vrsqrt.f32 %v76_v48  ;;  %v73_v52 = vmax.f32 %v69_v50, 0.0  ;;  %v71_v53 = vmax.f32 %v67_v51, 0.0 }
  0x9e   :  { %307 = vrsqrt.f32 %v74_v49 }
  0x9f   :  { %v77_v54 = vadd.f32 1e-05, %v73_v52  ;;  %v75_v55 = vadd.f32 1e-05, %v71_v53 }
  0xa1   :  { %309 = vrsqrt.f32 %v77_v54 }
  0xa2   :  { %311 = vrsqrt.f32 %v75_v55 }
  0xaa   :  { %v306_v57 = vpop.eup %305 }
  0xab   :  { %v308_v60 = vpop.eup %307  ;;  %v88_v61 = vmul.f32 %v306_v57, %v84_v56 }
  0xac   :  { %v86_v62 = vmul.f32 %v308_v60, %v82_v58 }
  0xad   :  { %v99_v4 = vmul.f32 %v245_v59, %v88_v61 }
  0xae   :  { %v310_v6 = vpop.eup %309  ;;  %v97_v7 = vmul.f32 %v245_v59, %v86_v62 }
  0xaf   :  { %v312_v8 = vpop.eup %311  ;;  %v110_v1 = vadd.f32 %v246_v63, %v99_v4  ;;  %v89_v9 = vmul.f32 %v310_v6, %v85_v3 }
  0xb0   :  { %v108_v10 = vadd.f32 %v246_v63, %v97_v7  ;;  %v87_v11 = vmul.f32 %v312_v8, %v83_v5 }
  0xb1   :  { %283 = vmatprep.mubr.msk.f32.mxu1 %vm25_vm0, %v110_v1  ;;  %v100_v12 = vmul.f32 %v245_v59, %v89_v9 }
  0xb2   :  { %280 = vmatprep.mubr.msk.f32.mxu0 %vm25_vm0, %v108_v10  ;;  %v98_v13 = vmul.f32 %v245_v59, %v87_v11 }
  0xb3   :  { %v111_v14 = vadd.f32 %v246_v63, %v100_v12 }
  0xb4   :  { %v109_v15 = vadd.f32 %v246_v63, %v98_v13 }
  0xb5   :  { %284 = vmatmul.mubr.msk.f32.vlgmr.msra.gmra.mxu1 %vm25_vm0, %v111_v14 }
  0xb6   :  { %281 = vmatmul.mubr.msk.f32.vlgmr.msra.gmra.mxu0 %vm25_vm0, %v109_v15 }
 0x175   :  { %v285_v2 = vpop.f32.mrf.mxu1 }
 0x176   :  { %v282_v16 = vpop.f32.mrf.mxu0  ;;  %v221_v17 = vadd.f32 %v285_v2, %v247_v0 }
 0x177   :  { %v211_v18 = vadd.f32 %v282_v16, %v247_v0  ;;  %v215_v19 = vpop.f32.mrf.mxu1 }
 0x178   :  { %228 = vst.msk [vmem:[#allocation2 + $0x18] sm:$0xff] %vm224_vm1, %v221_v17  ;;  %v205_v20 = vpop.f32.mrf.mxu0  ;;  %v216_v21 = vadd.f32 %v247_v0, %v215_v19 }
 0x179   :  { %226 = vst.msk [vmem:[#allocation2 + $0x8] sm:$0xff] %vm224_vm1, %v211_v18  ;;  %v206_v22 = vadd.f32 %v247_v0, %v205_v20 }
 0x17a   :  { %227 = vst.msk [vmem:[#allocation2 + $0x10] sm:$0xff] %vm224_vm1, %v216_v21 }
 0x17b   :  { %225 = vst.msk [vmem:[#allocation2] sm:$0xff] %vm224_vm1, %v206_v22 }
 0x17c   :  { %324 = shalt.err (!%p321_p4)
}
 0x17d   :  { %s336_s4 = smov 128   ;;  %s337_s22 = smov 8  }
 0x17e   :  { %240 = dma.vmem_to_hbm [thread:$0]  %s235_s20, 512, %s457_s5, [#allocation3], %s336_s4, %s336_s4, %s337_s22  }
 0x17f   :  { %333 = dma.done.wait [#allocation3], 512  }
 0x180   :  { %334 = vsyncadd [#allocation3], 4294966784 }
 0x181   :  { %244 = vsyncpa [#allocation3], 1 }

</bundles_post_ra>
